<compile_context>
chip_gen: v6e
topology: v6e:2x2x1
jax: 0.10.0
libtpu: 0.0.40
codegen_flags: <defaults>
</compile_context>

<pallas_src>
import functools

import jax
import jax.numpy as jnp
from jax.experimental import pallas as pl
from jax.experimental.pallas import tpu as pltpu


def _mixed_pool_kernel(x_ref, o_ref, max_ref, sum_ref, *, seq_len, ts, needs_mask):
    """x_ref: (TB, TS, TF) input tile; o_ref: (TB, TF); scratch: f32 (TB, TF) x2."""
    s_idx = pl.program_id(2)

    @pl.when(s_idx == 0)
    def _init():
        max_ref[...] = jnp.full(max_ref.shape, -jnp.inf, dtype=max_ref.dtype)
        sum_ref[...] = jnp.zeros(sum_ref.shape, dtype=sum_ref.dtype)

    x = x_ref[...]  # (TB, TS, TF) in the input dtype — no whole-tile f32 copy.

    if needs_mask:
        # Ragged last S-tile: neutralize out-of-range rows. Mask is built from a
        # (1, TS, 1) iota and broadcast by jnp.where (no full-tile iota).
        row = jax.lax.broadcasted_iota(jnp.int32, (1, x.shape[1], 1), 1)
        valid = (s_idx * ts + row) < seq_len
        x_for_max = jnp.where(valid, x, jnp.asarray(-jnp.inf, dtype=x.dtype))
        x_for_sum = jnp.where(valid, x, jnp.asarray(0, dtype=x.dtype))
    else:
        x_for_max = x
        x_for_sum = x

    tile_max = jnp.max(x_for_max, axis=1).astype(jnp.float32)   # (TB, TF)
    tile_sum = jnp.sum(x_for_sum, axis=1, dtype=jnp.float32)    # (TB, TF) f32 accum

    max_ref[...] = jnp.maximum(max_ref[...], tile_max)
    sum_ref[...] = sum_ref[...] + tile_sum

    @pl.when(s_idx == pl.num_programs(2) - 1)
    def _finalize():
        mean = sum_ref[...] * jnp.float32(1.0 / seq_len)   # multiply by 1/S
        o_ref[...] = ((max_ref[...] + mean) * jnp.float32(0.5)).astype(o_ref.dtype)


def global_mixed_pooling(x, *, tb=None, tf=None, ts=None,
                         vmem_tile_budget_bytes=12 * 1024 * 1024):
    """x: (B, S, F) -> (B, F), computed as (max_S(x) + mean_S(x)) / 2."""
    B, S, F = x.shape
    itemsize = jnp.dtype(x.dtype).itemsize

    # Batch tile: pack >=8 rows when possible so the output tile is sublane-dense.
    if tb is None:
        tb = B if B <= 8 else 8
    n_b = pl.cdiv(B, tb)

    # Feature tile: keep full F unless F is large, 128-aligned, and B gives no
    # parallelism — then split F so a 2-TC chip (v7x) has parallel work.
    if tf is None:
        if F % 128 == 0 and F >= 256 and n_b < 2:
            tf = 128
        else:
            tf = F
    n_f = pl.cdiv(F, tf)

    # Seq tile: biggest multiple of 8 that keeps the double-buffered input tile
    # inside the per-generation scoped-VMEM budget.
    if ts is None:
        row_bytes = max(1, tb * tf * itemsize)
        ts_cap = max(1, vmem_tile_budget_bytes // (2 * row_bytes))
        if ts_cap >= S:
            ts = S
        else:
            ts = max(8, (ts_cap // 8) * 8)
    n_s = pl.cdiv(S, ts)

    needs_mask = (S % ts) != 0

    kernel = functools.partial(
        _mixed_pool_kernel, seq_len=S, ts=ts, needs_mask=needs_mask)

    return pl.pallas_call(
        kernel,
        out_shape=jax.ShapeDtypeStruct((B, F), x.dtype),
        grid_spec=pltpu.PrefetchScalarGridSpec(
            num_scalar_prefetch=0,
            grid=(n_b, n_f, n_s),                      # reduction (S) axis last
            in_specs=[
                pl.BlockSpec((tb, ts, tf), lambda b, f, s: (b, s, f)),
            ],
            # Output block constant across the S axis -> resident accumulator tile.
            out_specs=pl.BlockSpec((tb, tf), lambda b, f, s: (b, f)),
            scratch_shapes=[
                pltpu.VMEM((tb, tf), jnp.float32),     # running max
                pltpu.VMEM((tb, tf), jnp.float32),     # running sum
            ],
        ),
        compiler_params=pltpu.CompilerParams(
            dimension_semantics=("parallel", "parallel", "arbitrary"),
            vmem_limit_bytes=32 * 1024 * 1024,
        ),
    )(x)


def global_mixed_pooling_ref(x):
    m = jnp.max(x, axis=1)
    a = jnp.mean(x, axis=1)
    return (m + a) * 0.5


if __name__ == "__main__":
    k1, k2 = jax.random.split(jax.random.PRNGKey(0))

    # Small shape consistent with the module: (batch, seq_len, n_features).
    B, S, F = 2, 8, 32
    x = jax.random.normal(k1, (B, S, F), dtype=jnp.float32)
    out = jax.block_until_ready(global_mixed_pooling(x))
    ref = global_mixed_pooling_ref(x)
    assert out.shape == (B, F), out.shape
    assert jnp.allclose(out, ref, atol=1e-5, rtol=1e-5), "mismatch vs reference (small)"

    # Exercise the tiled-S accumulator path with a ragged last S tile.
    x2 = jax.random.normal(k2, (4, 40, 128), dtype=jnp.float32)
    out2 = jax.block_until_ready(global_mixed_pooling(x2, ts=16))
    ref2 = global_mixed_pooling_ref(x2)
    assert out2.shape == (4, 128), out2.shape
    assert jnp.allclose(out2, ref2, atol=1e-5, rtol=1e-5), "mismatch vs reference (tiled)"

    print("KERNEL_OK")
</pallas_src>

<mosaic_0001>
module attributes {stable_mosaic.version = 11 : i64} {
  func.func @_mixed_pool_kernel(%arg0: i32, %arg1: i32, %arg2: i32, %arg3: memref<2x8x32xf32, #tpu.memory_space<vmem>>, %arg4: memref<2x32xf32, #tpu.memory_space<vmem>>, %arg5: memref<2x32xf32, #tpu.memory_space<vmem>>, %arg6: memref<2x32xf32, #tpu.memory_space<vmem>>) attributes {dimension_semantics = [#tpu.dimension_semantics<parallel>, #tpu.dimension_semantics<parallel>, #tpu.dimension_semantics<arbitrary>], iteration_bounds = array<i64: 1, 1, 1>, scalar_prefetch = 0 : i64, scratch_operands = 2 : i64, tpu.core_type = #tpu.core_type<tc>, window_params = [{transform_indices = @transform_0, window_bounds = array<i64: 2, 8, 32>}, {transform_indices = @transform_1, window_bounds = array<i64: 2, 32>}]} {
    %c0_i32 = arith.constant 0 : i32
    %0 = arith.cmpi eq, %arg2, %c0_i32 : i32
    %1 = arith.extui %0 : i1 to i32
    %c0_i32_0 = arith.constant 0 : i32
    %2 = arith.cmpi ne, %1, %c0_i32_0 : i32
    scf.if %2 {
      %cst_14 = arith.constant 0xFF800000 : f32
      %15 = vector.broadcast %cst_14 : f32 to vector<2x32xf32>
      %c0_15 = arith.constant 0 : index
      %c0_16 = arith.constant 0 : index
      %16 = vector.load %arg5[%c0_15, %c0_16] : memref<2x32xf32, #tpu.memory_space<vmem>>, vector<2x32xf32>
      tpu.vector_store %arg5[%c0_15, %c0_16], %15 {strides = array<i32>} : memref<2x32xf32, #tpu.memory_space<vmem>>, vector<2x32xf32>,
      %cst_17 = arith.constant 0.000000e+00 : f32
      %17 = vector.broadcast %cst_17 : f32 to vector<2x32xf32>
      %c0_18 = arith.constant 0 : index
      %c0_19 = arith.constant 0 : index
      %18 = vector.load %arg6[%c0_18, %c0_19] : memref<2x32xf32, #tpu.memory_space<vmem>>, vector<2x32xf32>
      tpu.vector_store %arg6[%c0_18, %c0_19], %17 {strides = array<i32>} : memref<2x32xf32, #tpu.memory_space<vmem>>, vector<2x32xf32>,
    } else {
    }
    %c0 = arith.constant 0 : index
    %c0_1 = arith.constant 0 : index
    %c0_2 = arith.constant 0 : index
    %3 = vector.load %arg3[%c0, %c0_1, %c0_2] : memref<2x8x32xf32, #tpu.memory_space<vmem>>, vector<2x8x32xf32>
    %cst = arith.constant dense<0xFF800000> : vector<2x32xf32>
    %4 = vector.multi_reduction <maximumf>, %3, %cst [1] : vector<2x8x32xf32> to vector<2x32xf32>
    %cst_3 = arith.constant dense<0.000000e+00> : vector<2x32xf32>
    %5 = vector.multi_reduction <add>, %3, %cst_3 [1] : vector<2x8x32xf32> to vector<2x32xf32>
    %c0_4 = arith.constant 0 : index
    %c0_5 = arith.constant 0 : index
    %6 = vector.load %arg5[%c0_4, %c0_5] : memref<2x32xf32, #tpu.memory_space<vmem>>, vector<2x32xf32>
    %7 = arith.maximumf %6, %4 : vector<2x32xf32>
    %c0_6 = arith.constant 0 : index
    %c0_7 = arith.constant 0 : index
    %8 = vector.load %arg5[%c0_6, %c0_7] : memref<2x32xf32, #tpu.memory_space<vmem>>, vector<2x32xf32>
    tpu.vector_store %arg5[%c0_6, %c0_7], %7 {strides = array<i32>} : memref<2x32xf32, #tpu.memory_space<vmem>>, vector<2x32xf32>,
    %c0_8 = arith.constant 0 : index
    %c0_9 = arith.constant 0 : index
    %9 = vector.load %arg6[%c0_8, %c0_9] : memref<2x32xf32, #tpu.memory_space<vmem>>, vector<2x32xf32>
    %10 = arith.addf %9, %5 : vector<2x32xf32>
    %c0_10 = arith.constant 0 : index
    %c0_11 = arith.constant 0 : index
    %11 = vector.load %arg6[%c0_10, %c0_11] : memref<2x32xf32, #tpu.memory_space<vmem>>, vector<2x32xf32>
    tpu.vector_store %arg6[%c0_10, %c0_11], %10 {strides = array<i32>} : memref<2x32xf32, #tpu.memory_space<vmem>>, vector<2x32xf32>,
    %c0_i32_12 = arith.constant 0 : i32
    %12 = arith.cmpi eq, %arg2, %c0_i32_12 : i32
    %13 = arith.extui %12 : i1 to i32
    %c0_i32_13 = arith.constant 0 : i32
    %14 = arith.cmpi ne, %13, %c0_i32_13 : i32
    scf.if %14 {
      %c0_14 = arith.constant 0 : index
      %c0_15 = arith.constant 0 : index
      %15 = vector.load %arg6[%c0_14, %c0_15] : memref<2x32xf32, #tpu.memory_space<vmem>>, vector<2x32xf32>
      %cst_16 = arith.constant 1.250000e-01 : f32
      %16 = vector.broadcast %cst_16 : f32 to vector<2x32xf32>
      %17 = arith.mulf %15, %16 : vector<2x32xf32>
      %c0_17 = arith.constant 0 : index
      %c0_18 = arith.constant 0 : index
      %18 = vector.load %arg5[%c0_17, %c0_18] : memref<2x32xf32, #tpu.memory_space<vmem>>, vector<2x32xf32>
      %19 = arith.addf %18, %17 : vector<2x32xf32>
      %cst_19 = arith.constant 5.000000e-01 : f32
      %20 = vector.broadcast %cst_19 : f32 to vector<2x32xf32>
      %21 = arith.mulf %19, %20 : vector<2x32xf32>
      %c0_20 = arith.constant 0 : index
      %c0_21 = arith.constant 0 : index
      %22 = vector.load %arg4[%c0_20, %c0_21] : memref<2x32xf32, #tpu.memory_space<vmem>>, vector<2x32xf32>
      tpu.vector_store %arg4[%c0_20, %c0_21], %21 {strides = array<i32>} : memref<2x32xf32, #tpu.memory_space<vmem>>, vector<2x32xf32>,
    } else {
    }
    return
  }
  func.func @transform_0(%arg0: i32, %arg1: i32, %arg2: i32) -> (i32, i32, i32) {
    %c0_i32 = arith.constant 0 : i32
    return %arg0, %arg2, %arg1 : i32, i32, i32
  }
  func.func @transform_1(%arg0: i32, %arg1: i32, %arg2: i32) -> (i32, i32) {
    %c0_i32 = arith.constant 0 : i32
    return %arg0, %arg1 : i32, i32
  }
}

</mosaic_0001>

<bundles_post_ra>
// kernel: tpu_custom_call.1
= control target key start
LH: loop header
LB: loop body
LE: loop exit
PB: predicated region body
PF: predicated region fallthrough
CT: control target
= control target key end

     0   :  { %6 = vsyncpa [#allocation5], 0  ;;  %s178_s0 = inlined_call_operand.hbm [shape: f32[2,8,32], index: 0, kind: input, shape index: {}]   ;;  %s179_s1 = inlined_call_operand.hbm [shape: f32[2,32], index: 1, kind: output, shape index: {}]  }
   0x1   :  { %7 = vsyncpa [#allocation6], 0  ;;  %s151_s6 = smov [#allocation4]  }
   0x2   :  { %s13_s7 = sshll.u32 %s151_s6, 4  ;;  %s14_s7 = int_to_ptr.vmem [resolvable:$true] %s13_s7 }
   0x3   :  { %s115_s8 = scalar_lea.vmem %s14_s7, 256  ;;  %p120_p1 = scmp.lt.s32.totalorder %s14_s7, %s14_s7 }
   0x4   :  { %p116_p0 = scmp.ne.s32.totalorder %s14_s7, %s115_s8  ;;  %p121_p2 = scmp.lt.s32.totalorder %s115_s8, %s115_s8 }
   0x6   :  { %p122_p3 = por %p121_p2, %p120_p1 }
   0x8   :  { %p123_p4 = pnand %p122_p3, %p116_p0 }
   0xa   :  { %126 = shalt.err (!%p123_p4)
}
   0xb   :  { %s152_s9 = smov 128   ;;  %s153_s10 = smov 8  }
   0xc   :  { %19 = dma.hbm_to_vmem [thread:$0]  %s178_s0, 256, %s14_s7, [#allocation5], %s152_s9, %s152_s9, %s153_s10  }
   0xd   :  { %147 = dma.done.wait [#allocation5], 256  }
   0xe   :  { %148 = vsyncadd [#allocation5], 4294967040  ;;  %vm27_vm0 = vcmask 254976   ;;  %v154_v0 = vmov 0.0   ;;  %v155_v1 = vmov -inf   ;;  %vm32_vm1 = vcmask 261120  }
   0xf   :  { %29 = vst.msk [vmem:[#allocation3] sm:$0x3] %vm27_vm0, %v154_v0  ;;  %28 = vst.msk [vmem:[#allocation2] sm:$0x3] %vm27_vm0, %v155_v1  ;;  %v30_v2 = vld [vmem:[#allocation4] sm:$0xff]  ;;  %v31_v3 = vld [vmem:[#allocation4 + $0x8] sm:$0xff] }
  0x10   :  { %v47_v4 = vsel %vm32_vm1, %v30_v2, 0.0  ;;  %v54_v5 = vsel %vm32_vm1, %v31_v3, 0.0  ;;  %v33_v6 = vsel %vm32_vm1, %v30_v2, -inf  ;;  %v40_v7 = vsel %vm32_vm1, %v31_v3, -inf  ;;  %s156_s0 = smov [#allocation7]  }
  0x11   :  { %v48_v8 = vrot.slane %v47_v4, 4  ;;  %v55_v9 = vrot.slane %v54_v5, 4  ;;  %v34_v10 = vrot.slane %v33_v6, 4  ;;  %v41_v11 = vrot.slane %v40_v7, 4  ;;  %s92_s13 = sshll.u32 %s156_s0, 4  ;;  %s93_s13 = int_to_ptr.vmem [resolvable:$true] %s92_s13 }
  0x12   :  { %vm64_vm2 = vcmask 1041409   ;;  %s127_s14 = scalar_lea.vmem %s93_s13, 32  ;;  %p132_p6 = scmp.lt.s32.totalorder %s93_s13, %s93_s13 }
  0x13   :  { %v49_v12 = vadd.f32 %v48_v8, %v47_v4  ;;  %v56_v13 = vadd.f32 %v55_v9, %v54_v5  ;;  %v35_v14 = vmax.f32 %v33_v6, %v34_v10  ;;  %v42_v15 = vmax.f32 %v40_v7, %v41_v11  ;;  %p128_p5 = scmp.ne.s32.totalorder %s93_s13, %s127_s14  ;;  %p133_p7 = scmp.lt.s32.totalorder %s127_s14, %s127_s14 }
  0x15   :  { %v50_v16 = vrot.slane %v49_v12, 2  ;;  %v57_v17 = vrot.slane %v56_v13, 2  ;;  %v36_v18 = vrot.slane %v35_v14, 2  ;;  %v43_v19 = vrot.slane %v42_v15, 2  ;;  %p134_p8 = por %p133_p7, %p132_p6 }
  0x16   :  { %v70_v30 = vld [vmem:[#allocation3] sm:$0x3]  ;;  %v61_v33 = vld [vmem:[#allocation2] sm:$0x3] }
  0x17   :  { %v51_v20 = vadd.f32 %v50_v16, %v49_v12  ;;  %v58_v21 = vadd.f32 %v57_v17, %v56_v13  ;;  %v37_v22 = vmax.f32 %v35_v14, %v36_v18  ;;  %v44_v23 = vmax.f32 %v42_v15, %v43_v19  ;;  %p135_p9 = pnand %p134_p8, %p128_p5 }
  0x19   :  { %v52_v24 = vrot.slane %v51_v20, 1  ;;  %v59_v25 = vrot.slane %v58_v21, 1  ;;  %v38_v26 = vrot.slane %v37_v22, 1  ;;  %v45_v27 = vrot.slane %v44_v23, 1 }
  0x1b   :  { %v53_v28 = vadd.f32 %v52_v24, %v51_v20  ;;  %v60_v29 = vadd.f32 %v59_v25, %v58_v21  ;;  %v39_v31 = vmax.f32 %v37_v22, %v38_v26  ;;  %v46_v32 = vmax.f32 %v44_v23, %v45_v27 }
  0x1d   :  { %v73_v34 = vsel %vm64_vm2, %v60_v29, %v53_v28  ;;  %v65_v35 = vsel %vm64_vm2, %v46_v32, %v39_v31 }
  0x1e   :  { %v75_v36 = vadd.f32 %v73_v34, %v70_v30  ;;  %v67_v37 = vmax.f32 %v61_v33, %v65_v35 }
  0x20   :  { %76 = vst.msk [vmem:[#allocation3] sm:$0x3] %vm27_vm0, %v75_v36  ;;  %69 = vst.msk [vmem:[#allocation2] sm:$0x3] %vm27_vm0, %v67_v37 }
  0x27   :  { %v80_v38 = vld [vmem:[#allocation3] sm:$0x3]  ;;  %v82_v39 = vld [vmem:[#allocation2] sm:$0x3] }
  0x28   :  { %v81_v40 = vmul.f32 0.125, %v80_v38 }
  0x2a   :  { %v83_v41 = vadd.f32 %v82_v39, %v81_v40 }
  0x2c   :  { %v84_v42 = vmul.f32 0.5, %v83_v41 }
  0x2e   :  { %85 = vst.msk [vmem:[#allocation7] sm:$0x3] %vm27_vm0, %v84_v42 }
  0x2f   :  { %138 = shalt.err (!%p135_p9)
}
  0x30   :  { %95 = dma.vmem_to_hbm [thread:$0]  %s93_s13, 32, %s179_s1, [#allocation6]  }
  0x31   :  { %149 = dma.done.wait [#allocation6], 32  }
  0x32   :  { %150 = vsyncadd [#allocation6], 4294967264 }
  0x33   :  { %99 = vsyncpa [#allocation5], 1 }
  0x34   :  { %100 = vsyncpa [#allocation6], 1 }

</bundles_post_ra>
